<compile_context>
chip_gen: v6e
topology: v6e:2x2x1
jax: 0.10.0
libtpu: 0.0.40
codegen_flags: <defaults>
</compile_context>

<pallas_src>
import functools

import jax
import jax.numpy as jnp
from jax import lax
from jax.experimental import pallas as pl
from jax.experimental.pallas import tpu as pltpu


def net_kernel(x_ref, y_ref, w_ref, b_ref, o_ref):
    # Elementwise hot path: sin(x) + cos(y)  (VPU + EUP), f32.
    act = jnp.sin(x_ref[...]) + jnp.cos(y_ref[...])
    # MXU matmul with weight kept in PyTorch [N, K] layout:
    # contract act dim 1 (K) with w dim 1 (K)  ->  (B, N).
    out = lax.dot_general(
        act,
        w_ref[...],
        dimension_numbers=(((1,), (1,)), ((), ())),
        preferred_element_type=jnp.float32,
    )
    o_ref[...] = (out + b_ref[...]).astype(o_ref.dtype)


@functools.partial(jax.jit, static_argnames=())
def net_forward(x, y, weight, bias):
    """x: [B, 64], y: [B, 64], weight: [10, 64] (PyTorch layout), bias: [10]."""
    B, K = x.shape
    N = weight.shape[0]
    b = bias.reshape(1, N)  # [1, N] broadcast row (metadata-only reshape)

    vmem = pl.BlockSpec(memory_space=pltpu.MemorySpace.VMEM)
    bytes_accessed = 4 * (2 * B * K + N * K + N + B * N)

    return pl.pallas_call(
        net_kernel,
        out_shape=jax.ShapeDtypeStruct((B, N), jnp.float32),
        in_specs=[vmem, vmem, vmem, vmem],
        out_specs=vmem,
        cost_estimate=pl.CostEstimate(
            flops=2 * B * K * N,
            transcendentals=2 * B * K,
            bytes_accessed=bytes_accessed,
        ),
    )(x, y, weight, b)


if __name__ == "__main__":
    key = jax.random.PRNGKey(0)
    kx, ky, kw, kb = jax.random.split(key, 4)

    B, K, N = 32, 64, 10
    x = jax.random.normal(kx, (B, K), dtype=jnp.float32)
    y = jax.random.normal(ky, (B, K), dtype=jnp.float32)

    # Deterministic nn.Linear(64, 10)-shaped parameters (Kaiming-uniform-ish bound).
    bound = 1.0 / (K ** 0.5)
    weight = jax.random.uniform(kw, (N, K), minval=-bound, maxval=bound, dtype=jnp.float32)
    bias = jax.random.uniform(kb, (N,), minval=-bound, maxval=bound, dtype=jnp.float32)

    out = net_forward(x, y, weight, bias)
    out = jax.block_until_ready(out)

    # Reference check in plain JAX.
    ref = (jnp.sin(x) + jnp.cos(y)) @ weight.T + bias
    assert out.shape == (B, N)
    assert jnp.allclose(out, ref, atol=1e-5, rtol=1e-5)

    print("KERNEL_OK")
</pallas_src>

<mosaic_0001>
module attributes {stable_mosaic.version = 11 : i64} {
  func.func @net_kernel(%arg0: memref<32x64xf32, #tpu.memory_space<vmem>>, %arg1: memref<32x64xf32, #tpu.memory_space<vmem>>, %arg2: memref<10x64xf32, #tpu.memory_space<vmem>>, %arg3: memref<1x10xf32, #tpu.memory_space<vmem>>, %arg4: memref<32x10xf32, #tpu.memory_space<vmem>>) attributes {dimension_semantics = [], scalar_prefetch = 0 : i64, scratch_operands = 0 : i64, tpu.core_type = #tpu.core_type<tc>} {
    %c0 = arith.constant 0 : index
    %c0_0 = arith.constant 0 : index
    %0 = vector.load %arg0[%c0, %c0_0] : memref<32x64xf32, #tpu.memory_space<vmem>>, vector<32x64xf32>
    %1 = math.sin %0 : vector<32x64xf32>
    %c0_1 = arith.constant 0 : index
    %c0_2 = arith.constant 0 : index
    %2 = vector.load %arg1[%c0_1, %c0_2] : memref<32x64xf32, #tpu.memory_space<vmem>>, vector<32x64xf32>
    %3 = math.cos %2 : vector<32x64xf32>
    %4 = arith.addf %1, %3 : vector<32x64xf32>
    %c0_3 = arith.constant 0 : index
    %c0_4 = arith.constant 0 : index
    %5 = vector.load %arg2[%c0_3, %c0_4] : memref<10x64xf32, #tpu.memory_space<vmem>>, vector<10x64xf32>
    %cst = arith.constant dense<0.000000e+00> : vector<32x10xf32>
    %6 = tpu.matmul %4, %5, %cst {dimension_numbers = #tpu.dot_dimension_numbers<[1], [1], [0], [0], [0, 0, 1, 0], [], []>} : vector<32x64xf32>, vector<10x64xf32>, vector<32x10xf32> -> vector<32x10xf32>
    %c0_5 = arith.constant 0 : index
    %c0_6 = arith.constant 0 : index
    %7 = vector.load %arg3[%c0_5, %c0_6] : memref<1x10xf32, #tpu.memory_space<vmem>>, vector<1x10xf32>
    %8 = vector.broadcast %7 : vector<1x10xf32> to vector<32x10xf32>
    %9 = arith.addf %6, %8 : vector<32x10xf32>
    %c0_7 = arith.constant 0 : index
    %c0_8 = arith.constant 0 : index
    %10 = vector.load %arg4[%c0_7, %c0_8] : memref<32x10xf32, #tpu.memory_space<vmem>>, vector<32x10xf32>
    tpu.vector_store %arg4[%c0_7, %c0_8], %9 {strides = array<i32>} : memref<32x10xf32, #tpu.memory_space<vmem>>, vector<32x10xf32>,
    return
  }
}

</mosaic_0001>

<bundles_post_ra>
// kernel: net_forward.1
= control target key start
LH: loop header
LB: loop body
LE: loop exit
PB: predicated region body
PF: predicated region fallthrough
CT: control target
= control target key end

     0   :  { %9 = vsyncpa [#allocation3], 0  ;;  %s1874_s0 = inlined_call_operand.hbm [shape: f32[32,64], index: 0, kind: input, shape index: {}]   ;;  %s1875_s1 = inlined_call_operand.hbm [shape: f32[32,64], index: 1, kind: input, shape index: {}]   ;;  %s1876_s2 = inlined_call_operand.hbm [shape: f32[10,64], index: 2, kind: input, shape index: {}]   ;;  %s1877_s3 = inlined_call_operand.vmem [shape: f32[1,10], index: 3, kind: input, shape index: {}]   ;;  %s1878_s4 = inlined_call_operand.vmem [shape: f32[32,10], index: 4, kind: output, shape index: {}]  }
   0x1   :  { %10 = vsyncpa [#allocation5], 0  ;;  %s1221_s15 = smov [#allocation4]   ;;  %s1222_s17 = smov [#allocation2]  }
   0x2   :  { %s28_s16 = sshll.u32 %s1221_s15, 4  ;;  %s16_s18 = sshll.u32 %s1222_s17, 4  ;;  %s29_s16 = int_to_ptr.vmem [resolvable:$true] %s28_s16  ;;  %s17_s18 = int_to_ptr.vmem [resolvable:$true] %s16_s18 }
   0x3   :  { %s1165_s19 = scalar_lea.vmem %s29_s16, 512  ;;  %p1170_p1 = scmp.lt.s32.totalorder %s29_s16, %s29_s16 }
   0x4   :  { %p1166_p0 = scmp.ne.s32.totalorder %s29_s16, %s1165_s19  ;;  %p1171_p2 = scmp.lt.s32.totalorder %s1165_s19, %s1165_s19 }
   0x6   :  { %p1172_p3 = por %p1171_p2, %p1170_p1 }
   0x8   :  { %p1173_p4 = pnand %p1172_p3, %p1166_p0 }
   0xa   :  { %1176 = shalt.err (!%p1173_p4)
}
   0xb   :  { %s1223_s20 = smov 128   ;;  %s1224_s21 = smov 8  }
   0xc   :  { %34 = dma.hbm_to_vmem [thread:$0]  %s1875_s1, 512, %s29_s16, [#allocation5], %s1223_s20, %s1223_s20, %s1224_s21  }
   0xd   :  { %s1185_s24 = scalar_lea.vmem %s17_s18, 512  ;;  %p1190_p6 = scmp.lt.s32.totalorder %s17_s18, %s17_s18 }
   0xe   :  { %p1186_p5 = scmp.ne.s32.totalorder %s17_s18, %s1185_s24  ;;  %p1191_p7 = scmp.lt.s32.totalorder %s1185_s24, %s1185_s24 }
  0x10   :  { %p1192_p8 = por %p1191_p7, %p1190_p6 }
  0x12   :  { %p1193_p9 = pnand %p1192_p8, %p1186_p5 }
  0x14   :  { %1196 = shalt.err (!%p1193_p9)
}
  0x15   :  { %22 = dma.hbm_to_vmem [thread:$0]  %s1874_s0, 512, %s17_s18, [#allocation3], %s1223_s20, %s1223_s20, %s1224_s21  }
  0x16   :  { %s1225_s27 = smov [#allocation6]  }
  0x17   :  { %s40_s28 = sshll.u32 %s1225_s27, 4  ;;  %s41_s28 = int_to_ptr.vmem [resolvable:$true] %s40_s28 }
  0x18   :  { %s1205_s29 = scalar_lea.vmem %s41_s28, 256  ;;  %p1210_p11 = scmp.lt.s32.totalorder %s41_s28, %s41_s28 }
  0x19   :  { %p1206_p10 = scmp.ne.s32.totalorder %s41_s28, %s1205_s29  ;;  %p1211_p12 = scmp.lt.s32.totalorder %s1205_s29, %s1205_s29 }
  0x1b   :  { %p1212_p13 = por %p1211_p12, %p1210_p11 }
  0x1d   :  { %p1213_p0 = pnand %p1212_p13, %p1206_p10 }
  0x1f   :  { %1216 = shalt.err (!%p1213_p0)
}
  0x20   :  { %46 = dma.hbm_to_vmem [thread:$0]  %s1876_s2, 256, %s41_s28, [#allocation5], %s1223_s20, %s1223_s20, %s1224_s21  }
  0x21   :  { %1217 = dma.done.wait [#allocation3], 512  }
  0x22   :  { %1218 = vsyncadd [#allocation3], 4294966784 }
  0x23   :  { %1219 = dma.done.wait [#allocation5], 768  }
  0x24   :  { %1220 = vsyncadd [#allocation5], 4294966528  ;;  %vm907_vm0 = vcmask 523264   ;;  %v899_v0 = vld [vmem:[#allocation6 + $0x8] sm:$0x3]  ;;  %v898_v1 = vld [vmem:[#allocation6] sm:$0xff] }
  0x25   :  { %v1266_v2 = vld [vmem:[#allocation2] sm:$0xff]  ;;  %1067 = vmatprep.subr.msk.mxu0 %vm907_vm0, %v899_v0  ;;  %1077 = vmatprep.subr.msk.mxu1 %vm907_vm0, %v899_v0  ;;  %v1274_v6 = vld [vmem:[#allocation2 + $0x10] sm:$0xff]  ;;  %v1226_v32 = vmov 683565275   ;;  %v1227_v34 = vmov 2475754826  }
  0x26   :  { %v62_v3 = vand.u32 2147483647, %v1266_v2  ;;  %v65_v4 = vand.u32 2139095040, %v1266_v2  ;;  %v1272_v5 = vld [vmem:[#allocation4] sm:$0xff]  ;;  %1068 = vmatpush3.xpose.msk.msra.mxu0 %vm907_vm0, %v899_v0  ;;  %1079 = vmatpush3.xpose.msk.msra.mxu1 %vm907_vm0, %v899_v0  ;;  %v273_v13 = vand.u32 2139095040, %v1274_v6  ;;  %vm64_vm14 = vcmp.lt.s32.totalorder %v1266_v2, 0 }
  0x27   :  { %v482_v7 = vand.u32 2147483647, %v1272_v5  ;;  %v485_v8 = vand.u32 2139095040, %v1272_v5  ;;  %1069 = vmatprep.subr.msk.mxu0 %vm907_vm0, %v898_v1  ;;  %1078 = vmatprep.subr.msk.mxu1 %vm907_vm0, %v898_v1  ;;  %v270_v26 = vand.u32 2147483647, %v1274_v6 }
  0x28   :  { %v66_v9 = vshrl.u32 %v65_v4, 23  ;;  %v69_v10 = vand.u32 8388607, %v62_v3  ;;  %v274_v16 = vshrl.u32 %v273_v13, 23  ;;  %v1228_v36 = vmov 2131351028  }
  0x29   :  { %v486_v11 = vshrl.u32 %v485_v8, 23  ;;  %v489_v12 = vand.u32 8388607, %v482_v7  ;;  %v1229_v38 = vmov 2102212464  }
  0x2a   :  { %v1022_v14 = vadd.s32 4294967169, %v66_v9  ;;  %1070 = vmatpush3.xpose.msk.msra.mxu0 %vm907_vm0, %v898_v1  ;;  %1080 = vmatpush3.xpose.msk.msra.mxu1 %vm907_vm0, %v898_v1  ;;  %v70_v18 = vor.u32 8388608, %v69_v10  ;;  %v1030_v21 = vadd.s32 4294967169, %v274_v16  ;;  %v1230_v40 = vmov 920167782  }
  0x2b   :  { %v1038_v15 = vadd.s32 4294967169, %v486_v11  ;;  %v490_v19 = vor.u32 8388608, %v489_v12  ;;  %v1231_v48 = vmov 1326507024  }
  0x2c   :  { %v72_v17 = vadd.s32 1, %v1022_v14  ;;  %v1290_v27 = vshll.u32 %v70_v18, 8  ;;  %v1294_v30 = vadd.s32 1, %v1030_v21 }
  0x2d   :  { %v492_v20 = vadd.s32 1, %v1038_v15  ;;  %v1292_v29 = vshll.u32 %v490_v19, 8 }
  0x2e   :  { %vm73_vm1 = vcmp.gt.s32.totalorder %v72_v17, 0  ;;  %vm281_vm7 = vcmp.gt.s32.totalorder %v1294_v30, 0 }
  0x2f   :  { %v74_v22 = vsel %vm73_vm1, %v72_v17, 0  ;;  %vm493_vm2 = vcmp.gt.s32.totalorder %v492_v20, 0 }
  0x30   :  { %v75_v23 = vshrl.u32 %v74_v22, 5  ;;  %v76_v24 = vand.u32 31, %v74_v22  ;;  %v494_v25 = vsel %vm493_vm2, %v492_v20, 0 }
  0x31   :  { %v496_v28 = vand.u32 31, %v494_v25  ;;  %v1301_v42 = vshrl.u32 %v494_v25, 5 }
  0x32   :  { %v77_v31 = vsub.s32 32, %v76_v24  ;;  %v79_v33 = vshll.u32 %v1226_v32, %v76_v24  ;;  %v82_v35 = vshll.u32 %v1227_v34, %v76_v24  ;;  %v85_v37 = vshll.u32 %v1228_v36, %v76_v24 }
  0x33   :  { %v88_v39 = vshll.u32 %v1229_v38, %v76_v24  ;;  %v91_v41 = vshll.u32 %v1230_v40, %v76_v24  ;;  %vm94_vm3 = vcmp.lt.s32.totalorder %v75_v23, 1  ;;  %vm95_vm4 = vcmp.lt.s32.totalorder %v75_v23, 2 }
  0x34   :  { %v78_v43 = vshrl.u32 %v1226_v32, %v77_v31  ;;  %v80_v44 = vshrl.u32 %v1227_v34, %v77_v31  ;;  %v83_v45 = vshrl.u32 %v1228_v36, %v77_v31  ;;  %v86_v46 = vshrl.u32 %v1229_v38, %v77_v31 }
  0x35   :  { %v89_v47 = vshrl.u32 %v1230_v40, %v77_v31  ;;  %v92_v49 = vshrl.u32 %v1231_v48, %v77_v31  ;;  %vm97_vm5 = vcmp.lt.s32.totalorder %v75_v23, 4  ;;  %v497_v53 = vsub.s32 32, %v496_v28 }
  0x36   :  { %v81_v50 = vor.u32 %v80_v44, %v79_v33  ;;  %v84_v51 = vor.u32 %v83_v45, %v82_v35  ;;  %v87_v52 = vor.u32 %v86_v46, %v85_v37  ;;  %vm96_vm6 = vcmp.lt.s32.totalorder %v75_v23, 3 }
  0x37   :  { %v90_v54 = vor.u32 %v89_v47, %v88_v39  ;;  %v93_v55 = vor.u32 %v92_v49, %v91_v41  ;;  %v499_v56 = vshll.u32 %v1226_v32, %v496_v28  ;;  %v502_v0 = vshll.u32 %v1227_v34, %v496_v28 }
  0x38   :  { %v98_v57 = vsel %vm94_vm3, %v78_v43, %v81_v50  ;;  %v99_v58 = vsel %vm97_vm5, %v87_v52, 2102212464  ;;  %v102_v59 = vsel %vm94_vm3, %v81_v50, %v84_v51  ;;  %v106_v60 = vsel %vm94_vm3, %v84_v51, %v87_v52 }
  0x39   :  { %v100_v61 = vsel %vm96_vm6, %v84_v51, %v99_v58  ;;  %v103_v62 = vsel %vm97_vm5, %v90_v54, 920167782  ;;  %v107_v63 = vsel %vm97_vm5, %v93_v55, 1326507024  ;;  %v498_v8 = vshrl.u32 %v1226_v32, %v497_v53 }
  0x3a   :  { %v104_v1 = vsel %vm96_vm6, %v87_v52, %v103_v62  ;;  %v108_v4 = vsel %vm96_vm6, %v90_v54, %v107_v63  ;;  %v500_v9 = vshrl.u32 %v1227_v34, %v497_v53  ;;  %v101_v10 = vsel %vm95_vm4, %v98_v57, %v100_v61 }
  0x3b   :  { %v105_v11 = vsel %vm95_vm4, %v102_v59, %v104_v1  ;;  %v109_v12 = vsel %vm95_vm4, %v106_v60, %v108_v4  ;;  %v503_v13 = vshrl.u32 %v1228_v36, %v497_v53  ;;  %v505_v20 = vshll.u32 %v1228_v36, %v496_v28 }
  0x3c   :  { %v1322_v14 = vmul.u32.u64.low %v1290_v27, %v109_v12  ;;  %v1323_v15 = vmul.u32.u64.high %v1290_v27, %v109_v12, %v1322_v14  ;;  %v1326_v16 = vmul.u32.u64.low %v1290_v27, %v105_v11  ;;  %v1327_v17 = vmul.u32.u64.high %v1290_v27, %v105_v11, %v1326_v16 }
  0x3d   :  { %v501_v18 = vor.u32 %v500_v9, %v499_v56  ;;  %v504_v19 = vor.u32 %v503_v13, %v502_v0  ;;  %v506_v21 = vshrl.u32 %v1229_v38, %v497_v53  ;;  %v508_v22 = vshll.u32 %v1229_v38, %v496_v28 }
  0x3e   :  { %v509_v23 = vshrl.u32 %v1230_v40, %v497_v53  ;;  %v511_v24 = vshll.u32 %v1230_v40, %v496_v28  ;;  %v512_v25 = vshrl.u32 %v1231_v48, %v497_v53  ;;  %v117_v31 = vmul.u32 %v1290_v27, %v101_v10 }
  0x3f   :  { %v507_v33 = vor.u32 %v506_v21, %v505_v20  ;;  %vm514_vm8 = vcmp.lt.s32.totalorder %v1301_v42, 1  ;;  %vm515_vm9 = vcmp.lt.s32.totalorder %v1301_v42, 2  ;;  %vm119_vm10 = vc.u32 %v1323_v15, %v1326_v16 }
  0x40   :  { %v120_v35 = vadd.s32 1, %v1327_v17  ;;  %v510_v37 = vor.u32 %v509_v23, %v508_v22  ;;  %vm516_vm11 = vcmp.lt.s32.totalorder %v1301_v42, 3  ;;  %v513_v39 = vor.u32 %v512_v25, %v511_v24 }
  0x41   :  { %vm517_vm12 = vcmp.lt.s32.totalorder %v1301_v42, 4  ;;  %v518_v28 = vsel %vm514_vm8, %v498_v8, %v501_v18  ;;  %v522_v41 = vsel %vm514_vm8, %v501_v18, %v504_v19  ;;  %v526_v45 = vsel %vm514_vm8, %v504_v19, %v507_v33 }
  0x42   :  { %v121_v27 = vsel %vm119_vm10, %v120_v35, %v1327_v17  ;;  %v519_v43 = vsel %vm517_vm12, %v507_v33, 2102212464  ;;  %v523_v44 = vsel %vm517_vm12, %v510_v37, 920167782  ;;  %v527_v50 = vsel %vm517_vm12, %v513_v39, 1326507024 }
  0x43   :  { %v122_v46 = vadd.s32 %v121_v27, %v117_v31  ;;  %v520_v47 = vsel %vm516_vm11, %v504_v19, %v519_v43  ;;  %v524_v49 = vsel %vm516_vm11, %v507_v33, %v523_v44  ;;  %v528_v53 = vsel %vm516_vm11, %v510_v37, %v527_v50 }
  0x44   :  { %v521_v51 = vsel %vm515_vm9, %v518_v28, %v520_v47  ;;  %v525_v52 = vsel %vm515_vm9, %v522_v41, %v524_v49  ;;  %v282_v54 = vsel %vm281_vm7, %v1294_v30, 0  ;;  %v529_v56 = vsel %vm515_vm9, %v526_v45, %v528_v53  ;;  %v1367_v30 = vld [vmem:[#allocation4 + $0x10] sm:$0xff] }
  0x45   :  { %v123_v55 = vadd.s32 536870912, %v122_v46  ;;  %v1355_v57 = vmul.u32.u64.low %v1292_v29, %v525_v52  ;;  %v1356_v58 = vmul.u32.u64.high %v1292_v29, %v525_v52, %v1355_v57  ;;  %v277_v61 = vand.u32 8388607, %v270_v26 }
  0x46   :  { %v1360_v59 = vmul.u32.u64.low %v1292_v29, %v529_v56  ;;  %v1361_v60 = vmul.u32.u64.high %v1292_v29, %v529_v56, %v1360_v59  ;;  %v284_v63 = vand.u32 31, %v282_v54  ;;  %v537_v42 = vmul.u32 %v1292_v29, %v521_v51 }
  0x47   :  { %v1365_v62 = vshrl.u32 %v123_v55, 30  ;;  %v540_v1 = vadd.s32 1, %v1356_v58  ;;  %v278_v8 = vor.u32 8388608, %v277_v61  ;;  %v691_v9 = vand.u32 2139095040, %v1367_v30 }
  0x48   :  { %v285_v4 = vsub.s32 32, %v284_v63  ;;  %vm539_vm13 = vc.u32 %v1361_v60, %v1355_v57  ;;  %v287_v12 = vshll.u32 %v1226_v32, %v284_v63  ;;  %v290_v13 = vshll.u32 %v1227_v34, %v284_v63 }
  0x49   :  { %v125_v0 = vshll.u32 %v1365_v62, 30  ;;  %v541_v11 = vsel %vm539_vm13, %v540_v1, %v1356_v58  ;;  %v283_v14 = vshrl.u32 %v282_v54, 5  ;;  %v293_v20 = vshll.u32 %v1228_v36, %v284_v63 }
  0x4a   :  { %v542_v29 = vadd.s32 %v541_v11, %v537_v42  ;;  %v288_v17 = vshrl.u32 %v1227_v34, %v285_v4  ;;  %v291_v18 = vshrl.u32 %v1228_v36, %v285_v4  ;;  %v294_v21 = vshrl.u32 %v1229_v38, %v285_v4 }
  0x4b   :  { %v1375_v10 = vsub.s32 %v122_v46, %v125_v0  ;;  %v688_v22 = vand.u32 2147483647, %v1367_v30  ;;  %v296_v24 = vshll.u32 %v1229_v38, %v284_v63  ;;  %v1387_v25 = vshll.u32 %v278_v8, 8 }
  0x4c   :  { %v543_v23 = vadd.s32 536870912, %v542_v29  ;;  %v692_v31 = vshrl.u32 %v691_v9, 23  ;;  %v289_v35 = vor.u32 %v288_v17, %v287_v12  ;;  %v292_v37 = vor.u32 %v291_v18, %v290_v13 }
  0x4d   :  { %v128_v19 = vsub.s32 0, %v1375_v10  ;;  %v297_v39 = vshrl.u32 %v1230_v40, %v285_v4  ;;  %v299_v41 = vshll.u32 %v1230_v40, %v284_v63  ;;  %v300_v27 = vshrl.u32 %v1231_v48, %v285_v4 }
  0x4e   :  { %v1392_v28 = vshrl.u32 %v543_v23, 30  ;;  %vm302_vm15 = vcmp.lt.s32.totalorder %v283_v14, 1  ;;  %v286_v44 = vshrl.u32 %v1226_v32, %v285_v4  ;;  %v295_v45 = vor.u32 %v294_v21, %v293_v20 }
  0x4f   :  { %v1023_v33 = vmin.u32 %v128_v19, %v1375_v10  ;;  %vm305_vm1 = vcmp.lt.s32.totalorder %v283_v14, 4  ;;  %v298_v47 = vor.u32 %v297_v39, %v296_v24  ;;  %vm303_vm2 = vcmp.lt.s32.totalorder %v283_v14, 2 }
  0x50   :  { %v545_v46 = vshll.u32 %v1392_v28, 30  ;;  %vm304_vm3 = vcmp.lt.s32.totalorder %v283_v14, 3  ;;  %v301_v50 = vor.u32 %v300_v27, %v299_v41  ;;  %v307_v51 = vsel %vm305_vm1, %v295_v45, 2102212464 }
  0x51   :  { %v130_v43 = vclz %v1023_v33  ;;  %v310_v52 = vsel %vm302_vm15, %v289_v35, %v292_v37  ;;  %v118_v53 = vadd.s32 %v1326_v16, %v1323_v15  ;;  %v148_v54 = vsub.s32 4, %v1365_v62 }
  0x52   :  { %v1403_v55 = vsub.s32 %v542_v29, %v545_v46  ;;  %v311_v56 = vsel %vm305_vm1, %v298_v47, 920167782  ;;  %v306_v58 = vsel %vm302_vm15, %v286_v44, %v289_v35  ;;  %v314_v61 = vsel %vm302_vm15, %v292_v37, %v295_v45 }
  0x53   :  { %v1024_v49 = vadd.s32 4294967294, %v130_v43  ;;  %v312_v59 = vsel %vm304_vm3, %v295_v45, %v311_v56  ;;  %v308_v0 = vsel %vm304_vm3, %v292_v37, %v307_v51  ;;  %v315_v8 = vsel %vm305_vm1, %v301_v50, 1326507024 }
  0x54   :  { %v548_v42 = vsub.s32 0, %v1403_v55  ;;  %v313_v15 = vsel %vm303_vm2, %v310_v52, %v312_v59  ;;  %v149_v9 = vsel %vm64_vm14, %v148_v54, %v1365_v62  ;;  %v1046_v12 = vadd.s32 4294967169, %v692_v31 }
  0x55   :  { %vm1025_vm4 = vcmp.lt.s32.totalorder %v1024_v49, 0  ;;  %v695_v13 = vand.u32 8388607, %v688_v22  ;;  %vm484_vm5 = vcmp.lt.s32.totalorder %v1272_v5, 0  ;;  %v309_v18 = vsel %vm303_vm2, %v306_v58, %v308_v0 }
  0x56   :  { %v133_v63 = vsel %vm1025_vm4, 0, %v1024_v49  ;;  %v1039_v11 = vmin.u32 %v548_v42, %v1403_v55  ;;  %v1425_v21 = vmul.u32.u64.low %v1387_v25, %v313_v15  ;;  %v1426_v62 = vmul.u32.u64.high %v1387_v25, %v313_v15, %v1425_v21 }
  0x57   :  { %v134_v16 = vsub.s32 32, %v133_v63  ;;  %v135_v1 = vshll.u32 %v1375_v10, %v133_v63  ;;  %v138_v4 = vsub.s32 4294967266, %v133_v63  ;;  %v316_v10 = vsel %vm304_vm3, %v298_v47, %v315_v8 }
  0x58   :  { %v550_v19 = vclz %v1039_v11  ;;  %v317_v20 = vsel %vm303_vm2, %v314_v61, %v316_v10  ;;  %vm1435_vm6 = vcmp.le.f32.partialorder %v62_v3, 0.7853982  ;;  %v538_v14 = vadd.s32 %v1355_v57, %v1361_v60 }
  0x59   :  { %v136_v29 = vshrl.u32 %v118_v53, %v134_v16  ;;  %v139_v17 = vadd.s32 127, %v138_v4  ;;  %v1430_v31 = vmul.u32.u64.low %v1387_v25, %v317_v20  ;;  %v1431_v33 = vmul.u32.u64.high %v1387_v25, %v317_v20, %v1430_v31 }
  0x5a   :  { %v1040_v37 = vadd.s32 4294967294, %v550_v19  ;;  %v698_v39 = vadd.s32 1, %v1046_v12  ;;  %v151_v43 = vsel %vm1435_vm6, 0, %v149_v9  ;;  %v325_v44 = vmul.u32 %v1387_v25, %v309_v18  ;;  %v1478_v18 = vld [vmem:[#allocation2 + $0x8] sm:$0xff] }
  0x5b   :  { %v137_v23 = vor.u32 %v136_v29, %v135_v1  ;;  %v140_v24 = vshll.u32 %v139_v17, 23  ;;  %v568_v45 = vsub.s32 4, %v1392_v28  ;;  %v328_v3 = vadd.s32 1, %v1426_v62 }
  0x5c   :  { %vm1041_vm7 = vcmp.lt.s32.totalorder %v1040_v37, 0  ;;  %vm699_vm8 = vcmp.gt.s32.totalorder %v698_v39, 0  ;;  %vm327_vm9 = vc.u32 %v1431_v33, %v1425_v21  ;;  %v696_v57 = vor.u32 8388608, %v695_v13 }
  0x5d   :  { %v141_v41 = vor.u32 4788187, %v140_v24  ;;  %v144_v27 = vcvt.s32.f32 %v137_v23  ;;  %v553_v47 = vsel %vm1041_vm7, 0, %v1040_v37  ;;  %v329_v51 = vsel %vm327_vm9, %v328_v3, %v1426_v62 }
  0x5e   :  { %v554_v60 = vsub.s32 32, %v553_v47  ;;  %v555_v49 = vshll.u32 %v1403_v55, %v553_v47  ;;  %v558_v50 = vsub.s32 4294967266, %v553_v47  ;;  %v155_v25 = vadd.s32 3, %v151_v43 }
  0x5f   :  { %v142_v46 = vand.u32 2147483647, %v141_v41  ;;  %v330_v53 = vadd.s32 %v329_v51, %v325_v44  ;;  %v700_v54 = vsel %vm699_vm8, %v698_v39, 0  ;;  %v1453_v59 = vsel %vm484_vm5, %v568_v45, %v1392_v28 }
  0x60   :  { %v556_v56 = vshrl.u32 %v538_v14, %v554_v60  ;;  %v559_v58 = vadd.s32 127, %v558_v50  ;;  %v702_v61 = vand.u32 31, %v700_v54  ;;  %vm1457_vm10 = vcmp.le.f32.partialorder %v482_v7, 0.7853982 }
  0x61   :  { %v145_v52 = vmul.f32 %v144_v27, %v142_v46  ;;  %v331_v42 = vadd.s32 536870912, %v330_v53  ;;  %v1463_v4 = vand.u32 3, %v155_v25  ;;  %v571_v28 = vsel %vm1457_vm10, 0, %v1453_v59 }
  0x62   :  { %v557_v0 = vor.u32 %v556_v56, %v555_v49  ;;  %v560_v15 = vshll.u32 %v559_v58, 23  ;;  %v703_v16 = vsub.s32 32, %v702_v61  ;;  %v1473_v12 = vshll.u32 %v696_v57, 8 }
  0x63   :  { %v146_v63 = vxor.u32 2147483648, %v145_v52  ;;  %v1468_v8 = vshrl.u32 %v331_v42, 30  ;;  %v705_v29 = vshll.u32 %v1226_v32, %v702_v61  ;;  %v708_v17 = vshll.u32 %v1227_v34, %v702_v61 }
  0x64   :  { %v561_v9 = vor.u32 4788187, %v560_v15  ;;  %v564_v11 = vcvt.s32.f32 %v557_v0  ;;  %v706_v19 = vshrl.u32 %v1227_v34, %v703_v16  ;;  %v709_v20 = vshrl.u32 %v1228_v36, %v703_v16 }
  0x65   :  { %v147_v1 = vsel %vm64_vm14, %v146_v63, %v145_v52  ;;  %v333_v13 = vshll.u32 %v1468_v8, 30  ;;  %v701_v23 = vshrl.u32 %v700_v54, 5  ;;  %v714_v24 = vshll.u32 %v1229_v38, %v702_v61 }
  0x66   :  { %v150_v7 = vsel %vm1435_vm6, %v1266_v2, %v147_v1  ;;  %v562_v10 = vand.u32 2147483647, %v561_v9  ;;  %v166_v31 = vand.u32 2147483647, %v1478_v18  ;;  %v711_v14 = vshll.u32 %v1228_v36, %v702_v61 }
  0x67   :  { %1124 = vcosq.f32 %v150_v7  ;;  %v1482_v62 = vsub.s32 %v330_v53, %v333_v13  ;;  %v712_v37 = vshrl.u32 %v1229_v38, %v703_v16  ;;  %v169_v39 = vand.u32 2139095040, %v1478_v18 }
  0x68   :  { %1126 = vsinq.f32 %v150_v7  ;;  %v565_v35 = vmul.f32 %v564_v11, %v562_v10  ;;  %v704_v27 = vshrl.u32 %v1226_v32, %v703_v16  ;;  %v715_v43 = vshrl.u32 %v1230_v40, %v703_v16 }
  0x69   :  { %v336_v41 = vsub.s32 0, %v1482_v62  ;;  %v717_v44 = vshll.u32 %v1230_v40, %v702_v61  ;;  %v707_v3 = vor.u32 %v706_v19, %v705_v29  ;;  %v710_v46 = vor.u32 %v709_v20, %v708_v17 }
  0x6a   :  { %v566_v45 = vxor.u32 2147483648, %v565_v35  ;;  %v718_v47 = vshrl.u32 %v1231_v48, %v703_v16  ;;  %v326_v57 = vadd.s32 %v1425_v21, %v1431_v33  ;;  %v716_v49 = vor.u32 %v715_v43, %v714_v24 }
  0x6b   :  { %v1031_v60 = vmin.u32 %v336_v41, %v1482_v62  ;;  %vm720_vm11 = vcmp.lt.s32.totalorder %v701_v23, 1  ;;  %v713_v51 = vor.u32 %v712_v37, %v711_v14  ;;  %vm723_vm12 = vcmp.lt.s32.totalorder %v701_v23, 4 }
  0x6c   :  { %v567_v50 = vsel %vm484_vm5, %v566_v45, %v565_v35  ;;  %v719_v52 = vor.u32 %v718_v47, %v717_v44  ;;  %vm721_vm13 = vcmp.lt.s32.totalorder %v701_v23, 2  ;;  %vm722_vm14 = vcmp.lt.s32.totalorder %v701_v23, 3 }
  0x6d   :  { %v570_v25 = vsel %vm1457_vm10, %v1272_v5, %v567_v50  ;;  %v338_v53 = vclz %v1031_v60  ;;  %v724_v21 = vsel %vm720_vm11, %v704_v27, %v707_v3  ;;  %v725_v33 = vsel %vm723_vm12, %v713_v51, 2102212464 }
  0x6e   :  { %1128 = vcosq.f32 %v570_v25  ;;  %v728_v54 = vsel %vm720_vm11, %v707_v3, %v710_v46  ;;  %v726_v58 = vsel %vm722_vm14, %v710_v46, %v725_v33  ;;  %v729_v61 = vsel %vm723_vm12, %v716_v49, 920167782 }
  0x6f   :  { %1130 = vsinq.f32 %v570_v25  ;;  %v1032_v56 = vadd.s32 4294967294, %v338_v53  ;;  %v730_v63 = vsel %vm722_vm14, %v713_v51, %v729_v61  ;;  %v732_v42 = vsel %vm720_vm11, %v710_v46, %v713_v51 }
  0x70   :  { %v733_v0 = vsel %vm723_vm12, %v719_v52, 1326507024  ;;  %v170_v15 = vshrl.u32 %v169_v39, 23  ;;  %v727_v16 = vsel %vm721_vm13, %v724_v21, %v726_v58  ;;  %v731_v1 = vsel %vm721_vm13, %v728_v54, %v730_v63 }
  0x71   :  { %vm1033_vm15 = vcmp.lt.s32.totalorder %v1032_v56, 0  ;;  %v734_v7 = vsel %vm722_vm14, %v716_v49, %v733_v0  ;;  %v1512_v29 = vmul.u32.u64.low %v1473_v12, %v731_v1  ;;  %v1513_v17 = vmul.u32.u64.high %v1473_v12, %v731_v1, %v1512_v29 }
  0x72   :  { %v341_v11 = vsel %vm1033_vm15, 0, %v1032_v56  ;;  %v735_v13 = vsel %vm721_vm13, %v732_v42, %v734_v7  ;;  %vm154_vm1 = vweird.f32 %v1266_v2  ;;  %v1026_v23 = vadd.s32 4294967169, %v170_v15 }
  0x73   :  { %v342_v20 = vsub.s32 32, %v341_v11  ;;  %v343_v24 = vshll.u32 %v1482_v62, %v341_v11  ;;  %v346_v35 = vsub.s32 4294967266, %v341_v11  ;;  %vm158_vm2 = vcmp.eq.s32.totalorder %v1463_v4, 0 }
  0x74   :  { %v1125_v9 = vpop.eup %1124  ;;  %v1519_v37 = vmul.u32.u64.low %v1473_v12, %v735_v13  ;;  %v1520_v39 = vmul.u32.u64.high %v1473_v12, %v735_v13, %v1519_v37  ;;  %vm161_vm3 = vcmp.eq.s32.totalorder %v1463_v4, 2  ;;  %vm157_vm4 = vcmp.lt.s32.totalorder %v1463_v4, 2 }
  0x75   :  { %v1127_v10 = vpop.eup %1126  ;;  %v162_v19 = vxor.u32 2147483648, %v1125_v9  ;;  %v344_v41 = vshrl.u32 %v326_v57, %v342_v20  ;;  %v347_v27 = vadd.s32 127, %v346_v35  ;;  %vm574_vm5 = vweird.f32 %v1272_v5 }
  0x76   :  { %v159_v14 = vxor.u32 2147483648, %v1127_v10  ;;  %v743_v43 = vmul.u32 %v1473_v12, %v727_v16  ;;  %v746_v62 = vadd.s32 1, %v1513_v17  ;;  %v176_v44 = vadd.s32 1, %v1026_v23 }
  0x77   :  { %v575_v45 = vand.u32 3, %v571_v28  ;;  %v345_v3 = vor.u32 %v344_v41, %v343_v24  ;;  %v348_v46 = vshll.u32 %v347_v27, 23  ;;  %v173_v47 = vand.u32 8388607, %v166_v31 }
  0x78   :  { %v160_v57 = vsel %vm158_vm2, %v1125_v9, %v159_v14  ;;  %v163_v60 = vsel %vm161_vm3, %v162_v19, %v1127_v10  ;;  %vm745_vm6 = vc.u32 %v1520_v39, %v1512_v29  ;;  %vm177_vm7 = vcmp.gt.s32.totalorder %v176_v44, 0 }
  0x79   :  { %v349_v12 = vor.u32 4788187, %v348_v46  ;;  %v352_v49 = vcvt.s32.f32 %v345_v3  ;;  %v747_v50 = vsel %vm745_vm6, %v746_v62, %v1513_v17  ;;  %v178_v51 = vsel %vm177_vm7, %v176_v44, 0  ;;  %v1576_v62 = vld [vmem:[#allocation4 + $0x8] sm:$0xff] }
  0x7a   :  { %vm1539_vm8 = vcmp.le.f32.partialorder %v270_v26, 0.7853982  ;;  %vm272_vm9 = vcmp.lt.s32.totalorder %v1274_v6, 0  ;;  %v748_v55 = vadd.s32 %v747_v50, %v743_v43  ;;  %v180_v28 = vand.u32 31, %v178_v51 }
  0x7b   :  { %v1129_v52 = vpop.eup %1128  ;;  %v164_v25 = vsel %vm157_vm4, %v160_v57, %v163_v60  ;;  %vm576_vm10 = vcmp.lt.s32.totalorder %v575_v45, 2  ;;  %vm580_vm11 = vcmp.eq.s32.totalorder %v575_v45, 2  ;;  %v350_v53 = vand.u32 2147483647, %v349_v12 }
  0x7c   :  { %v1131_v21 = vpop.eup %1130  ;;  %vm577_vm12 = vcmp.eq.s32.totalorder %v575_v45, 0  ;;  %v581_v33 = vxor.u32 2147483648, %v1129_v52  ;;  %v749_v54 = vadd.s32 536870912, %v748_v55  ;;  %v181_v56 = vsub.s32 32, %v180_v28 }
  0x7d   :  { %v578_v26 = vxor.u32 2147483648, %v1131_v21  ;;  %v353_v58 = vmul.f32 %v352_v49, %v350_v53  ;;  %v356_v61 = vsub.s32 4, %v1468_v8  ;;  %v174_v63 = vor.u32 8388608, %v173_v47 }
  0x7e   :  { %v165_v42 = vsel %vm154_vm1, nan, %v164_v25  ;;  %v582_v0 = vsel %vm580_vm11, %v581_v33, %v1131_v21  ;;  %v1549_v15 = vshrl.u32 %v749_v54, 30  ;;  %v179_v4 = vshrl.u32 %v178_v51, 5 }
  0x7f   :  { %v579_v16 = vsel %vm577_vm12, %v1129_v52, %v578_v26  ;;  %v354_v1 = vxor.u32 2147483648, %v353_v58  ;;  %v183_v7 = vshll.u32 %v1226_v32, %v180_v28  ;;  %v186_v9 = vshll.u32 %v1227_v34, %v180_v28 }
  0x80   :  { %v583_v11 = vsel %vm576_vm10, %v579_v16, %v582_v0  ;;  %v751_v13 = vshll.u32 %v1549_v15, 30  ;;  %v184_v17 = vshrl.u32 %v1227_v34, %v181_v56  ;;  %v187_v10 = vshrl.u32 %v1228_v36, %v181_v56 }
  0x81   :  { %v584_v2 = vsel %vm574_vm5, nan, %v583_v11  ;;  %v355_v19 = vsel %vm272_vm9, %v354_v1, %v353_v58  ;;  %v189_v20 = vshll.u32 %v1228_v36, %v180_v28  ;;  %v190_v24 = vshrl.u32 %v1229_v38, %v181_v56 }
  0x82   :  { %v894_v35 = vadd.f32 %v584_v2, %v165_v42  ;;  %v357_v14 = vsel %vm272_vm9, %v356_v61, %v1468_v8  ;;  %v1566_v37 = vsub.s32 %v748_v55, %v751_v13  ;;  %v1568_v23 = vshll.u32 %v174_v63, 8 }
  0x83   :  { %v358_v5 = vsel %vm1539_vm8, %v1274_v6, %v355_v19  ;;  %v182_v41 = vshrl.u32 %v1226_v32, %v181_v56  ;;  %v192_v27 = vshll.u32 %v1229_v38, %v180_v28  ;;  %v193_v43 = vshrl.u32 %v1230_v40, %v181_v56 }
  0x84   :  { %1071 = vmatprep.mubr.msk.f32.mxu0 %vm907_vm0, %v894_v35  ;;  %v754_v8 = vsub.s32 0, %v1566_v37  ;;  %v185_v44 = vor.u32 %v184_v17, %v183_v7  ;;  %v188_v45 = vor.u32 %v187_v10, %v186_v9  ;;  %v195_v3 = vshll.u32 %v1230_v40, %v180_v28 }
  0x85   :  { %v191_v46 = vor.u32 %v190_v24, %v189_v20  ;;  %v194_v47 = vor.u32 %v193_v43, %v192_v27  ;;  %v196_v6 = vshrl.u32 %v1231_v48, %v181_v56  ;;  %vm198_vm13 = vcmp.lt.s32.totalorder %v179_v4, 1 }
  0x86   :  { %1132 = vcosq.f32 %v358_v5  ;;  %v1047_v57 = vmin.u32 %v754_v8, %v1566_v37  ;;  %vm199_vm14 = vcmp.lt.s32.totalorder %v179_v4, 2  ;;  %v588_v60 = vand.u32 2139095040, %v1576_v62 }
  0x87   :  { %v197_v12 = vor.u32 %v196_v6, %v195_v3  ;;  %vm200_vm15 = vcmp.lt.s32.totalorder %v179_v4, 3  ;;  %vm201_vm1 = vcmp.lt.s32.totalorder %v179_v4, 4  ;;  %v202_v49 = vsel %vm198_vm13, %v182_v41, %v185_v44  ;;  %v1622_v3 = vld [vmem:[#allocation2 + $0x18] sm:$0xff] }
  0x88   :  { %v756_v50 = vclz %v1047_v57  ;;  %v203_v51 = vsel %vm201_vm1, %v191_v46, 2102212464  ;;  %v206_v55 = vsel %vm198_vm13, %v185_v44, %v188_v45  ;;  %v207_v52 = vsel %vm201_vm1, %v194_v47, 920167782 }
  0x89   :  { %v204_v28 = vsel %vm200_vm15, %v188_v45, %v203_v51  ;;  %v208_v25 = vsel %vm200_vm15, %v191_v46, %v207_v52  ;;  %v210_v53 = vsel %vm198_vm13, %v188_v45, %v191_v46  ;;  %v211_v21 = vsel %vm201_vm1, %v197_v12, 1326507024 }
  0x8a   :  { %v1048_v33 = vadd.s32 4294967294, %v756_v50  ;;  %v774_v54 = vsub.s32 4, %v1549_v15  ;;  %v209_v56 = vsel %vm199_vm14, %v206_v55, %v208_v25  ;;  %v212_v26 = vsel %vm200_vm15, %v194_v47, %v211_v21 }
  0x8b   :  { %v205_v58 = vsel %vm199_vm14, %v202_v49, %v204_v28  ;;  %v213_v61 = vsel %vm199_vm14, %v210_v53, %v212_v26  ;;  %v1589_v63 = vmul.u32.u64.low %v1568_v23, %v209_v56  ;;  %v1590_v42 = vmul.u32.u64.high %v1568_v23, %v209_v56, %v1589_v63 }
  0x8c   :  { %v744_v0 = vadd.s32 %v1512_v29, %v1520_v39  ;;  %vm1049_vm2 = vcmp.lt.s32.totalorder %v1048_v33, 0  ;;  %v1595_v16 = vmul.u32.u64.low %v1568_v23, %v213_v61  ;;  %v1596_v1 = vmul.u32.u64.high %v1568_v23, %v213_v61, %v1595_v16 }
  0x8d   :  { %v359_v7 = vsel %vm1539_vm8, 0, %v357_v14  ;;  %vm690_vm3 = vcmp.lt.s32.totalorder %v1367_v30, 0  ;;  %v759_v9 = vsel %vm1049_vm2, 0, %v1048_v33  ;;  %v589_v4 = vshrl.u32 %v588_v60, 23 }
  0x8e   :  { %v760_v11 = vsub.s32 32, %v759_v9  ;;  %v761_v13 = vshll.u32 %v1566_v37, %v759_v9  ;;  %v764_v17 = vsub.s32 4294967266, %v759_v9  ;;  %v221_v10 = vmul.u32 %v1568_v23, %v205_v58 }
  0x8f   :  { %v775_v29 = vsel %vm690_vm3, %v774_v54, %v1549_v15  ;;  %v224_v39 = vadd.s32 1, %v1590_v42  ;;  %v585_v2 = vand.u32 2147483647, %v1576_v62  ;;  %v1042_v59 = vadd.s32 4294967169, %v589_v4 }
  0x90   :  { %1134 = vsinq.f32 %v358_v5  ;;  %v762_v19 = vshrl.u32 %v744_v0, %v760_v11  ;;  %v765_v20 = vadd.s32 127, %v764_v17  ;;  %vm223_vm4 = vc.u32 %v1596_v1, %v1589_v63 }
  0x91   :  { %v363_v24 = vadd.s32 3, %v359_v7  ;;  %v225_v35 = vsel %vm223_vm4, %v224_v39, %v1590_v42  ;;  %v595_v14 = vadd.s32 1, %v1042_v59  ;;  %vm1612_vm5 = vcmp.le.f32.partialorder %v688_v22, 0.7853982 }
  0x92   :  { %v763_v15 = vor.u32 %v762_v19, %v761_v13  ;;  %v766_v23 = vshll.u32 %v765_v20, 23  ;;  %v226_v41 = vadd.s32 %v225_v35, %v221_v10  ;;  %v777_v5 = vsel %vm1612_vm5, 0, %v775_v29 }
  0x93   :  { %v1616_v27 = vpop.eup %1132  ;;  %vm596_vm6 = vcmp.gt.s32.totalorder %v595_v14, 0  ;;  %v592_v45 = vand.u32 8388607, %v585_v2  ;;  %v1624_v22 = vand.u32 3, %v363_v24  ;;  %v1628_v57 = vand.u32 3, %v777_v5 }
  0x94   :  { %v767_v43 = vor.u32 4788187, %v766_v23  ;;  %v770_v8 = vcvt.s32.f32 %v763_v15  ;;  %v227_v44 = vadd.s32 536870912, %v226_v41  ;;  %v597_v46 = vsel %vm596_vm6, %v595_v14, 0 }
  0x95   :  { %v599_v60 = vand.u32 31, %v597_v46  ;;  %v377_v12 = vand.u32 2139095040, %v1622_v3  ;;  %v593_v51 = vor.u32 8388608, %v592_v45  ;;  %v598_v55 = vshrl.u32 %v597_v46, 5 }
  0x96   :  { %v768_v47 = vand.u32 2147483647, %v767_v43  ;;  %v1626_v6 = vshrl.u32 %v227_v44, 30  ;;  %vm369_vm7 = vcmp.eq.s32.totalorder %v1624_v22, 2  ;;  %v370_v52 = vxor.u32 2147483648, %v1616_v27 }
  0x97   :  { %v1635_v28 = vadd.s32 %v1589_v63, %v1596_v1  ;;  %v600_v25 = vsub.s32 32, %v599_v60  ;;  %v602_v53 = vshll.u32 %v1226_v32, %v599_v60  ;;  %vm366_vm8 = vcmp.eq.s32.totalorder %v1624_v22, 0 }
  0x98   :  { %v771_v49 = vmul.f32 %v770_v8, %v768_v47  ;;  %v229_v50 = vshll.u32 %v1626_v6, 30  ;;  %v605_v54 = vshll.u32 %v1227_v34, %v599_v60  ;;  %v608_v56 = vshll.u32 %v1228_v36, %v599_v60 }
  0x99   :  { %v603_v26 = vshrl.u32 %v1227_v34, %v600_v25  ;;  %v606_v58 = vshrl.u32 %v1228_v36, %v600_v25  ;;  %v611_v61 = vshll.u32 %v1229_v38, %v599_v60  ;;  %v378_v63 = vshrl.u32 %v377_v12, 23 }
  0x9a   :  { %v772_v21 = vxor.u32 2147483648, %v771_v49  ;;  %v1639_v33 = vsub.s32 %v226_v41, %v229_v50  ;;  %v609_v16 = vshrl.u32 %v1229_v38, %v600_v25  ;;  %vm617_vm9 = vcmp.lt.s32.totalorder %v598_v55, 1 }
  0x9b   :  { %v601_v9 = vshrl.u32 %v1226_v32, %v600_v25  ;;  %v604_v4 = vor.u32 %v603_v26, %v602_v53  ;;  %v612_v11 = vshrl.u32 %v1230_v40, %v600_v25  ;;  %vm365_vm10 = vcmp.lt.s32.totalorder %v1624_v22, 2 }
  0x9c   :  { %v773_v42 = vsel %vm690_vm3, %v772_v21, %v771_v49  ;;  %v232_v0 = vsub.s32 0, %v1639_v33  ;;  %v607_v17 = vor.u32 %v606_v58, %v605_v54  ;;  %v610_v10 = vor.u32 %v609_v16, %v608_v56  ;;  %v1156_v58 = vld [vmem:[#allocation2 + $0x10] sm:$0xff] }
  0x9d   :  { %v1135_v1 = vpop.eup %1134  ;;  %v776_v7 = vsel %vm1612_vm5, %v1367_v30, %v773_v42  ;;  %v613_v29 = vor.u32 %v612_v11, %v611_v61  ;;  %v614_v39 = vshll.u32 %v1230_v40, %v599_v60  ;;  %v615_v59 = vshrl.u32 %v1231_v48, %v600_v25 }
  0x9e   :  { %1136 = vcosq.f32 %v776_v7  ;;  %v1027_v13 = vmin.u32 %v232_v0, %v1639_v33  ;;  %v367_v19 = vxor.u32 2147483648, %v1135_v1  ;;  %v633_v24 = vshll.u32 %v593_v51, 8 }
  0x9f   :  { %1138 = vsinq.f32 %v776_v7  ;;  %v1034_v35 = vadd.s32 4294967169, %v378_v63  ;;  %v616_v14 = vor.u32 %v615_v59, %v614_v39  ;;  %vm618_vm11 = vcmp.lt.s32.totalorder %v598_v55, 2 }
  0xa0   :  { %v234_v20 = vclz %v1027_v13  ;;  %vm619_vm12 = vcmp.lt.s32.totalorder %v598_v55, 3  ;;  %vm620_vm13 = vcmp.lt.s32.totalorder %v598_v55, 4  ;;  %v621_v15 = vsel %vm617_vm9, %v601_v9, %v604_v4 }
  0xa1   :  { %v622_v23 = vsel %vm620_vm13, %v610_v10, 2102212464  ;;  %v625_v41 = vsel %vm617_vm9, %v604_v4, %v607_v17  ;;  %v626_v43 = vsel %vm620_vm13, %v613_v29, 920167782  ;;  %v629_v8 = vsel %vm617_vm9, %v607_v17, %v610_v10 }
  0xa2   :  { %v1028_v37 = vadd.s32 4294967294, %v234_v20  ;;  %v623_v5 = vsel %vm619_vm12, %v607_v17, %v622_v23  ;;  %v630_v44 = vsel %vm620_vm13, %v616_v14, 1326507024  ;;  %v371_v45 = vsel %vm369_vm7, %v370_v52, %v1135_v1 }
  0xa3   :  { %v627_v46 = vsel %vm619_vm12, %v610_v10, %v626_v43  ;;  %v631_v47 = vsel %vm619_vm12, %v613_v29, %v630_v44  ;;  %v368_v60 = vsel %vm366_vm8, %v1616_v27, %v367_v19  ;;  %v624_v53 = vsel %vm618_vm11, %v621_v15, %v623_v5 }
  0xa4   :  { %vm1029_vm14 = vcmp.lt.s32.totalorder %v1028_v37, 0  ;;  %v628_v49 = vsel %vm618_vm11, %v625_v41, %v627_v46  ;;  %v632_v50 = vsel %vm618_vm11, %v629_v8, %v631_v47  ;;  %v384_v21 = vadd.s32 1, %v1034_v35 }
  0xa5   :  { %v237_v12 = vsel %vm1029_vm14, 0, %v1028_v37  ;;  %v1670_v54 = vmul.u32.u64.low %v633_v24, %v632_v50  ;;  %v1671_v56 = vmul.u32.u64.high %v633_v24, %v632_v50, %v1670_v54  ;;  %vm362_vm15 = vweird.f32 %v1156_v58 }
  0xa6   :  { %v238_v51 = vsub.s32 32, %v237_v12  ;;  %v242_v25 = vsub.s32 4294967266, %v237_v12  ;;  %v1673_v52 = vmul.u32.u64.low %v633_v24, %v628_v49  ;;  %v1674_v26 = vmul.u32.u64.high %v633_v24, %v628_v49, %v1673_v52 }
  0xa7   :  { %vm385_vm1 = vcmp.gt.s32.totalorder %v384_v21, 0  ;;  %v372_v61 = vsel %vm365_vm10, %v368_v60, %v371_v45  ;;  %v640_v63 = vmul.u32 %v633_v24, %v624_v53  ;;  %v374_v42 = vand.u32 2147483647, %v1622_v3  ;;  %v1712_v53 = vld [vmem:[#allocation4 + $0x18] sm:$0xff] }
  0xa8   :  { %v243_v27 = vadd.s32 127, %v242_v25  ;;  %v386_v55 = vsel %vm385_vm1, %v384_v21, 0  ;;  %v239_v0 = vshll.u32 %v1639_v33, %v237_v12  ;;  %v240_v16 = vshrl.u32 %v1635_v28, %v238_v51 }
  0xa9   :  { %v388_v7 = vand.u32 31, %v386_v55  ;;  %vm780_vm2 = vweird.f32 %v1367_v30  ;;  %vm786_vm3 = vcmp.eq.s32.totalorder %v1628_v57, 2  ;;  %vm642_vm4 = vc.u32 %v1671_v56, %v1673_v52 }
  0xaa   :  { %v244_v1 = vshll.u32 %v243_v27, 23  ;;  %v643_v22 = vadd.s32 1, %v1674_v26  ;;  %vm782_vm5 = vcmp.lt.s32.totalorder %v1628_v57, 2  ;;  %vm783_vm6 = vcmp.eq.s32.totalorder %v1628_v57, 0 }
  0xab   :  { %v1137_v9 = vpop.eup %1136  ;;  %v389_v11 = vsub.s32 32, %v388_v7  ;;  %v373_v28 = vsel %vm362_vm15, nan, %v372_v61  ;;  %v381_v10 = vand.u32 8388607, %v374_v42  ;;  %v241_v39 = vor.u32 %v240_v16, %v239_v0 }
  0xac   :  { %v1139_v4 = vpop.eup %1138  ;;  %v787_v33 = vxor.u32 2147483648, %v1137_v9  ;;  %v644_v17 = vsel %vm642_vm4, %v643_v22, %v1674_v26  ;;  %v245_v59 = vor.u32 4788187, %v244_v1  ;;  %v387_v24 = vshrl.u32 %v386_v55, 5 }
  0xad   :  { %v784_v13 = vxor.u32 2147483648, %v1139_v4  ;;  %v645_v19 = vadd.s32 %v644_v17, %v640_v63  ;;  %v391_v35 = vshll.u32 %v1226_v32, %v388_v7  ;;  %v394_v14 = vshll.u32 %v1227_v34, %v388_v7 }
  0xae   :  { %v788_v29 = vsel %vm786_vm3, %v787_v33, %v1139_v4  ;;  %v392_v23 = vshrl.u32 %v1227_v34, %v389_v11  ;;  %v395_v41 = vshrl.u32 %v1228_v36, %v389_v11  ;;  %v397_v43 = vshll.u32 %v1228_v36, %v388_v7 }
  0xaf   :  { %v785_v20 = vsel %vm783_vm6, %v1137_v9, %v784_v13  ;;  %v646_v15 = vadd.s32 536870912, %v645_v19  ;;  %v398_v8 = vshrl.u32 %v1229_v38, %v389_v11  ;;  %v400_v44 = vshll.u32 %v1229_v38, %v388_v7 }
  0xb0   :  { %v789_v37 = vsel %vm782_vm5, %v785_v20, %v788_v29  ;;  %v246_v46 = vand.u32 2147483647, %v245_v59  ;;  %v248_v47 = vcvt.s32.f32 %v241_v39  ;;  %v382_v57 = vor.u32 8388608, %v381_v10 }
  0xb1   :  { %v790_v5 = vsel %vm780_vm2, nan, %v789_v37  ;;  %v1704_v60 = vshrl.u32 %v646_v15, 30  ;;  %v401_v12 = vshrl.u32 %v1230_v40, %v389_v11  ;;  %v403_v49 = vshll.u32 %v1230_v40, %v388_v7 }
  0xb2   :  { %v896_v45 = vadd.f32 %v790_v5, %v373_v28  ;;  %v404_v50 = vshrl.u32 %v1231_v48, %v389_v11  ;;  %v390_v51 = vshrl.u32 %v1226_v32, %v389_v11  ;;  %v393_v25 = vor.u32 %v392_v23, %v391_v35 }
  0xb3   :  { %v648_v30 = vshll.u32 %v1704_v60, 30  ;;  %v396_v21 = vor.u32 %v395_v41, %v394_v14  ;;  %v399_v54 = vor.u32 %v398_v8, %v397_v43  ;;  %v402_v26 = vor.u32 %v401_v12, %v400_v44 }
  0xb4   :  { %1074 = vmatprep.mubr.msk.f32.mxu1 %vm907_vm0, %v896_v45  ;;  %v405_v58 = vor.u32 %v404_v50, %v403_v49  ;;  %v249_v27 = vmul.f32 %v248_v47, %v246_v46  ;;  %vm406_vm7 = vcmp.lt.s32.totalorder %v387_v24, 1  ;;  %vm409_vm8 = vcmp.lt.s32.totalorder %v387_v24, 4 }
  0xb5   :  { %v649_v61 = vsub.s32 %v645_v19, %v648_v30  ;;  %vm408_vm9 = vcmp.lt.s32.totalorder %v387_v24, 3  ;;  %v411_v63 = vsel %vm409_vm8, %v399_v54, 2102212464  ;;  %v422_v55 = vshll.u32 %v382_v57, 8 }
  0xb6   :  { %v794_v0 = vand.u32 2139095040, %v1712_v53  ;;  %vm407_vm10 = vcmp.lt.s32.totalorder %v387_v24, 2  ;;  %v410_v1 = vsel %vm406_vm7, %v390_v51, %v393_v25  ;;  %v412_v7 = vsel %vm408_vm9, %v396_v21, %v411_v63 }
  0xb7   :  { %v651_v16 = vsub.s32 0, %v649_v61  ;;  %v414_v9 = vsel %vm406_vm7, %v393_v25, %v396_v21  ;;  %v415_v22 = vsel %vm409_vm8, %v402_v26, 920167782  ;;  %v418_v4 = vsel %vm406_vm7, %v396_v21, %v399_v54 }
  0xb8   :  { %v419_v33 = vsel %vm409_vm8, %v405_v58, 1326507024  ;;  %v250_v11 = vxor.u32 2147483648, %v249_v27  ;;  %vm168_vm11 = vcmp.lt.s32.totalorder %v1478_v18, 0  ;;  %v416_v13 = vsel %vm408_vm9, %v399_v54, %v415_v22 }
  0xb9   :  { %v1043_v28 = vmin.u32 %v651_v16, %v649_v61  ;;  %v420_v17 = vsel %vm408_vm9, %v402_v26, %v419_v33  ;;  %v795_v10 = vshrl.u32 %v794_v0, 23  ;;  %v413_v39 = vsel %vm407_vm10, %v410_v1, %v412_v7 }
  0xba   :  { %v417_v59 = vsel %vm407_vm10, %v414_v9, %v416_v13  ;;  %v421_v19 = vsel %vm407_vm10, %v418_v4, %v420_v17  ;;  %vm1731_vm12 = vcmp.le.f32.partialorder %v166_v31, 0.7853982  ;;  %v251_v23 = vsel %vm168_vm11, %v250_v11, %v249_v27 }
  0xbb   :  { %v653_v29 = vclz %v1043_v28  ;;  %v1722_v20 = vmul.u32.u64.low %v422_v55, %v421_v19  ;;  %v1723_v35 = vmul.u32.u64.high %v422_v55, %v421_v19, %v1722_v20  ;;  %v1050_v5 = vadd.s32 4294967169, %v795_v10 }
  0xbc   :  { %v1725_v14 = vmul.u32.u64.low %v422_v55, %v417_v59  ;;  %v1726_v37 = vmul.u32.u64.high %v422_v55, %v417_v59, %v1725_v14  ;;  %v252_v24 = vsub.s32 4, %v1626_v6  ;;  %v641_v43 = vadd.s32 %v1673_v52, %v1671_v56 }
  0xbd   :  { %v1044_v41 = vadd.s32 4294967294, %v653_v29  ;;  %v429_v8 = vmul.u32 %v422_v55, %v413_v39  ;;  %v801_v44 = vadd.s32 1, %v1050_v5  ;;  %v254_v31 = vsel %vm1731_vm12, %v1478_v18, %v251_v23 }
  0xbe   :  { %vm431_vm14 = vc.u32 %v1723_v35, %v1725_v14  ;;  %v432_v46 = vadd.s32 1, %v1726_v37  ;;  %v253_v56 = vsel %vm168_vm11, %v252_v24, %v1626_v6  ;;  %v791_v49 = vand.u32 2147483647, %v1712_v53 }
  0xbf   :  { %vm1045_vm13 = vcmp.lt.s32.totalorder %v1044_v41, 0  ;;  %vm802_vm15 = vcmp.gt.s32.totalorder %v801_v44, 0  ;;  %1140 = vcosq.f32 %v254_v31  ;;  %v255_v54 = vsel %vm1731_vm12, 0, %v253_v56 }
  0xc0   :  { %v656_v45 = vsel %vm1045_vm13, 0, %v1044_v41  ;;  %v433_v52 = vsel %vm431_vm14, %v432_v46, %v1726_v37  ;;  %v803_v50 = vsel %vm802_vm15, %v801_v44, 0  ;;  %1142 = vsinq.f32 %v254_v31 }
  0xc1   :  { %v657_v47 = vsub.s32 32, %v656_v45  ;;  %v658_v57 = vshll.u32 %v649_v61, %v656_v45  ;;  %v661_v12 = vsub.s32 4294967266, %v656_v45  ;;  %v434_v25 = vadd.s32 %v433_v52, %v429_v8 }
  0xc2   :  { %v805_v21 = vand.u32 31, %v803_v50  ;;  %v798_v6 = vand.u32 8388607, %v791_v49  ;;  %vm587_vm1 = vcmp.lt.s32.totalorder %v1576_v62, 0  ;;  %v259_v16 = vadd.s32 3, %v255_v54 }
  0xc3   :  { %v659_v30 = vshrl.u32 %v641_v43, %v657_v47  ;;  %v662_v51 = vadd.s32 127, %v661_v12  ;;  %v435_v27 = vadd.s32 536870912, %v434_v25  ;;  %vm1760_vm2 = vcmp.le.f32.partialorder %v585_v2, 0.7853982 }
  0xc4   :  { %v806_v61 = vsub.s32 32, %v805_v21  ;;  %v808_v7 = vshll.u32 %v1226_v32, %v805_v21  ;;  %v811_v9 = vshll.u32 %v1227_v34, %v805_v21  ;;  %v799_v28 = vor.u32 8388608, %v798_v6 }
  0xc5   :  { %v660_v26 = vor.u32 %v659_v30, %v658_v57  ;;  %v663_v58 = vshll.u32 %v662_v51, 23  ;;  %v1756_v0 = vshrl.u32 %v435_v27, 30  ;;  %v804_v13 = vshrl.u32 %v803_v50, 5 }
  0xc6   :  { %v809_v33 = vshrl.u32 %v1227_v34, %v806_v61  ;;  %v812_v11 = vshrl.u32 %v1228_v36, %v806_v61  ;;  %v814_v17 = vshll.u32 %v1228_v36, %v805_v21  ;;  %v817_v2 = vshll.u32 %v1229_v38, %v805_v21 }
  0xc7   :  { %v664_v63 = vor.u32 4788187, %v663_v58  ;;  %v667_v55 = vcvt.s32.f32 %v660_v26  ;;  %v437_v4 = vshll.u32 %v1756_v0, 30  ;;  %v815_v39 = vshrl.u32 %v1229_v38, %v806_v61 }
  0xc8   :  { %v818_v59 = vshrl.u32 %v1230_v40, %v806_v61  ;;  %v1775_v19 = vand.u32 3, %v259_v16  ;;  %v671_v20 = vsub.s32 4, %v1704_v60  ;;  %v820_v34 = vshll.u32 %v1230_v40, %v805_v21 }
  0xc9   :  { %v665_v22 = vand.u32 2147483647, %v664_v63  ;;  %v1771_v29 = vsub.s32 %v434_v25, %v437_v4  ;;  %v821_v37 = vshrl.u32 %v1231_v48, %v806_v61  ;;  %v810_v23 = vor.u32 %v809_v33, %v808_v7 }
  0xca   :  { %v813_v41 = vor.u32 %v812_v11, %v811_v9  ;;  %v807_v5 = vshrl.u32 %v1226_v32, %v806_v61  ;;  %v819_v24 = vor.u32 %v818_v59, %v817_v2  ;;  %vm823_vm3 = vcmp.lt.s32.totalorder %v804_v13, 1 }
  0xcb   :  { %v668_v10 = vmul.f32 %v667_v55, %v665_v22  ;;  %v440_v36 = vsub.s32 0, %v1771_v29  ;;  %v839_v38 = vshll.u32 %v799_v28, 8  ;;  %v816_v44 = vor.u32 %v815_v39, %v814_v17 }
  0xcc   :  { %vm826_vm4 = vcmp.lt.s32.totalorder %v804_v13, 4  ;;  %v1141_v40 = vpop.eup %1140  ;;  %v822_v31 = vor.u32 %v821_v37, %v820_v34  ;;  %vm824_vm5 = vcmp.lt.s32.totalorder %v804_v13, 2  ;;  %vm825_vm6 = vcmp.lt.s32.totalorder %v804_v13, 3 }
  0xcd   :  { %v669_v15 = vxor.u32 2147483648, %v668_v10  ;;  %v1035_v8 = vmin.u32 %v440_v36, %v1771_v29  ;;  %v828_v45 = vsel %vm826_vm4, %v816_v44, 2102212464  ;;  %v831_v46 = vsel %vm823_vm3, %v810_v23, %v813_v41  ;;  %v1143_v12 = vpop.eup %1142 }
  0xce   :  { %vm265_vm7 = vcmp.eq.s32.totalorder %v1775_v19, 2  ;;  %v672_v47 = vsel %vm587_vm1, %v671_v20, %v1704_v60  ;;  %v832_v57 = vsel %vm826_vm4, %v819_v24, 920167782  ;;  %v266_v56 = vxor.u32 2147483648, %v1141_v40 }
  0xcf   :  { %v670_v43 = vsel %vm587_vm1, %v669_v15, %v668_v10  ;;  %v442_v32 = vclz %v1035_v8  ;;  %v833_v50 = vsel %vm825_vm6, %v816_v44, %v832_v57  ;;  %v835_v30 = vsel %vm823_vm3, %v813_v41, %v816_v44 }
  0xd0   :  { %v673_v48 = vsel %vm1760_vm2, %v1576_v62, %v670_v43  ;;  %v827_v51 = vsel %vm823_vm3, %v807_v5, %v810_v23  ;;  %v829_v25 = vsel %vm825_vm6, %v813_v41, %v828_v45  ;;  %v834_v21 = vsel %vm824_vm5, %v831_v46, %v833_v50 }
  0xd1   :  { %1144 = vcosq.f32 %v673_v48  ;;  %v1036_v52 = vadd.s32 4294967294, %v442_v32  ;;  %v836_v54 = vsel %vm826_vm4, %v822_v31, 1326507024  ;;  %v263_v27 = vxor.u32 2147483648, %v1143_v12 }
  0xd2   :  { %1146 = vsinq.f32 %v673_v48  ;;  %v837_v60 = vsel %vm825_vm6, %v819_v24, %v836_v54  ;;  %v1802_v26 = vmul.u32.u64.low %v839_v38, %v834_v21  ;;  %v1803_v58 = vmul.u32.u64.high %v839_v38, %v834_v21, %v1802_v26 }
  0xd3   :  { %vm1037_vm8 = vcmp.lt.s32.totalorder %v1036_v52, 0  ;;  %v674_v6 = vsel %vm1760_vm2, 0, %v672_v47  ;;  %v838_v63 = vsel %vm824_vm5, %v835_v30, %v837_v60  ;;  %vm262_vm9 = vcmp.eq.s32.totalorder %v1775_v19, 0 }
  0xd4   :  { %v445_v61 = vsel %vm1037_vm8, 0, %v1036_v52  ;;  %v830_v16 = vsel %vm824_vm5, %v827_v51, %v829_v25  ;;  %vm261_vm10 = vcmp.lt.s32.totalorder %v1775_v19, 2  ;;  %v267_v22 = vsel %vm265_vm7, %v266_v56, %v1143_v12 }
  0xd5   :  { %v450_v55 = vsub.s32 4294967266, %v445_v61  ;;  %v1811_v7 = vmul.u32.u64.low %v839_v38, %v838_v63  ;;  %v1812_v9 = vmul.u32.u64.high %v839_v38, %v838_v63, %v1811_v7  ;;  %v678_v4 = vand.u32 3, %v674_v6 }
  0xd6   :  { %v430_v1 = vadd.s32 %v1725_v14, %v1723_v35  ;;  %v849_v33 = vadd.s32 1, %v1803_v58  ;;  %v264_v11 = vsel %vm262_vm9, %v1141_v40, %v263_v27  ;;  %v446_v28 = vsub.s32 32, %v445_v61 }
  0xd7   :  { %v451_v17 = vadd.s32 127, %v450_v55  ;;  %v846_v2 = vmul.u32 %v839_v38, %v830_v16  ;;  %vm848_vm11 = vc.u32 %v1812_v9, %v1802_v26  ;;  %vm258_vm12 = vweird.f32 %v1478_v18 }
  0xd8   :  { %v268_v13 = vsel %vm261_vm10, %v264_v11, %v267_v22  ;;  %vm683_vm13 = vcmp.eq.s32.totalorder %v678_v4, 2  ;;  %v850_v10 = vsel %vm848_vm11, %v849_v33, %v1803_v58  ;;  %v447_v59 = vshll.u32 %v1771_v29, %v445_v61 }
  0xd9   :  { %v448_v19 = vshrl.u32 %v430_v1, %v446_v28  ;;  %v452_v20 = vshll.u32 %v451_v17, 23  ;;  %v851_v35 = vadd.s32 %v850_v10, %v846_v2  ;;  %vm680_vm14 = vcmp.eq.s32.totalorder %v678_v4, 0 }
  0xda   :  { %vm679_vm15 = vcmp.lt.s32.totalorder %v678_v4, 2  ;;  %v269_v36 = vsel %vm258_vm12, nan, %v268_v13  ;;  %vm677_vm1 = vweird.f32 %v1576_v62  ;;  %vm376_vm2 = vcmp.lt.s32.totalorder %v1622_v3, 0 }
  0xdb   :  { %v852_v15 = vadd.s32 536870912, %v851_v35  ;;  %v449_v41 = vor.u32 %v448_v19, %v447_v59  ;;  %v453_v5 = vor.u32 4788187, %v452_v20  ;;  %v847_v57 = vadd.s32 %v1802_v26, %v1812_v9 }
  0xdc   :  { %vm1829_vm4 = vcmp.le.f32.partialorder %v374_v42, 0.7853982  ;;  %v460_v42 = vsub.s32 4, %v1756_v0  ;;  %vm793_vm5 = vcmp.lt.s32.totalorder %v1712_v53, 0  ;;  %vm1845_vm6 = vcmp.le.f32.partialorder %v791_v49, 0.7853982 }
  0xdd   :  { %v853_v24 = vshrl.u32 %v852_v15, 30  ;;  %v454_v44 = vand.u32 2147483647, %v453_v5  ;;  %v456_v40 = vcvt.s32.f32 %v449_v41  ;;  %vm466_vm11 = vweird.f32 %v1622_v3  ;;  %v1054_v41 = vld [vmem:[%s1877_s3] ss:$0 sm:$0xff] }
  0xde   :  { %v1145_v39 = vpop.eup %1144  ;;  %v461_v61 = vsel %vm376_vm2, %v460_v42, %v1756_v0 }
  0xdf   :  { %v1147_v14 = vpop.eup %1146  ;;  %v684_v34 = vxor.u32 2147483648, %v1145_v39  ;;  %v854_v29 = vshll.u32 %v853_v24, 30  ;;  %v457_v32 = vmul.f32 %v456_v40, %v454_v44  ;;  %v463_v7 = vsel %vm1829_vm4, 0, %v461_v61 }
  0xe0   :  { %v681_v37 = vxor.u32 2147483648, %v1147_v14  ;;  %v877_v22 = vsub.s32 4, %v853_v24  ;;  %v467_v0 = vadd.s32 3, %v463_v7 }
  0xe1   :  { %v685_v18 = vsel %vm683_vm13, %v684_v34, %v1147_v14  ;;  %v855_v48 = vsub.s32 %v851_v35, %v854_v29  ;;  %v458_v47 = vxor.u32 2147483648, %v457_v32 }
  0xe2   :  { %v682_v23 = vsel %vm680_vm14, %v1145_v39, %v681_v37  ;;  %v878_v33 = vsel %vm793_vm5, %v877_v22, %v853_v24  ;;  %v468_v49 = vand.u32 3, %v467_v0  ;;  %vm883_vm14 = vweird.f32 %v1712_v53 }
  0xe3   :  { %v686_v38 = vsel %vm679_vm15, %v682_v23, %v685_v18  ;;  %v857_v31 = vsub.s32 0, %v855_v48  ;;  %v459_v52 = vsel %vm376_vm2, %v458_v47, %v457_v32  ;;  %v880_v28 = vsel %vm1845_vm6, 0, %v878_v33 }
  0xe4   :  { %v687_v43 = vsel %vm677_vm1, nan, %v686_v38  ;;  %v462_v54 = vsel %vm1829_vm4, %v1622_v3, %v459_v52  ;;  %vm470_vm7 = vcmp.eq.s32.totalorder %v468_v49, 0  ;;  %vm473_vm8 = vcmp.eq.s32.totalorder %v468_v49, 2 }
  0xe5   :  { %v895_v8 = vadd.f32 %v687_v43, %v269_v36  ;;  %v1051_v45 = vmin.u32 %v857_v31, %v855_v48  ;;  %1148 = vcosq.f32 %v462_v54  ;;  %v884_v13 = vand.u32 3, %v880_v28 }
  0xe6   :  { %1150 = vsinq.f32 %v462_v54  ;;  %vm469_vm9 = vcmp.lt.s32.totalorder %v468_v49, 2  ;;  %vm1011_vm15 = vcmask 80896  }
  0xe7   :  { %1072 = vmatmul.mubr.msk.f32.vlgmr.msra.gmra.mxu0 %vm907_vm0, %v895_v8  ;;  %v859_v46 = vclz %v1051_v45  ;;  %vm889_vm10 = vcmp.eq.s32.totalorder %v884_v13, 2  ;;  %vm886_vm12 = vcmp.eq.s32.totalorder %v884_v13, 0  ;;  %vm885_vm13 = vcmp.lt.s32.totalorder %v884_v13, 2 }
  0xe9   :  { %v1052_v62 = vadd.s32 4294967294, %v859_v46 }
  0xeb   :  { %vm1053_vm3 = vcmp.lt.s32.totalorder %v1052_v62, 0 }
  0xec   :  { %v862_v56 = vsel %vm1053_vm3, 0, %v1052_v62 }
  0xed   :  { %v863_v50 = vsub.s32 32, %v862_v56  ;;  %v864_v30 = vshll.u32 %v855_v48, %v862_v56  ;;  %v867_v51 = vsub.s32 4294967266, %v862_v56 }
  0xef   :  { %v865_v25 = vshrl.u32 %v847_v57, %v863_v50  ;;  %v868_v21 = vadd.s32 127, %v867_v51 }
  0xf1   :  { %v866_v60 = vor.u32 %v865_v25, %v864_v30  ;;  %v869_v26 = vshll.u32 %v868_v21, 23 }
  0xf2   :  { %v1149_v1 = vpop.eup %1148 }
  0xf3   :  { %v870_v58 = vor.u32 4788187, %v869_v26  ;;  %v873_v27 = vcvt.s32.f32 %v866_v60  ;;  %v1151_v11 = vpop.eup %1150  ;;  %v474_v2 = vxor.u32 2147483648, %v1149_v1 }
  0xf4   :  { %v471_v17 = vxor.u32 2147483648, %v1151_v11 }
  0xf5   :  { %v871_v6 = vand.u32 2147483647, %v870_v58  ;;  %v475_v39 = vsel %vm473_vm8, %v474_v2, %v1151_v11 }
  0xf6   :  { %v472_v10 = vsel %vm470_vm7, %v1149_v1, %v471_v17 }
  0xf7   :  { %v874_v63 = vmul.f32 %v873_v27, %v871_v6  ;;  %v476_v20 = vsel %vm469_vm9, %v472_v10, %v475_v39 }
  0xf8   :  { %v477_v37 = vsel %vm466_vm11, nan, %v476_v20 }
  0xf9   :  { %v875_v16 = vxor.u32 2147483648, %v874_v63 }
  0xfb   :  { %v876_v9 = vsel %vm793_vm5, %v875_v16, %v874_v63 }
  0xfc   :  { %v879_v4 = vsel %vm1845_vm6, %v1712_v53, %v876_v9 }
  0xfd   :  { %1152 = vcosq.f32 %v879_v4 }
  0xfe   :  { %1154 = vsinq.f32 %v879_v4 }
 0x10a   :  { %v1153_v59 = vpop.eup %1152 }
 0x10b   :  { %v1155_v19 = vpop.eup %1154  ;;  %v890_v35 = vxor.u32 2147483648, %v1153_v59 }
 0x10c   :  { %v887_v14 = vxor.u32 2147483648, %v1155_v19 }
 0x10d   :  { %v891_v34 = vsel %vm889_vm10, %v890_v35, %v1155_v19 }
 0x10e   :  { %v888_v15 = vsel %vm886_vm12, %v1153_v59, %v887_v14 }
 0x10f   :  { %v892_v36 = vsel %vm885_vm13, %v888_v15, %v891_v34 }
 0x110   :  { %v893_v18 = vsel %vm883_vm14, nan, %v892_v36 }
 0x111   :  { %v897_v23 = vadd.f32 %v893_v18, %v477_v37 }
 0x113   :  { %1075 = vmatmul.mubr.msk.f32.vlgmr.msra.gmra.mxu1 %vm907_vm0, %v897_v23 }
 0x1a7   :  { %v1073_v3 = vpop.f32.mrf.mxu0 }
 0x1a8   :  { %v998_v5 = vadd.f32 %v1073_v3, %v1054_v41 }
 0x1a9   :  { %v992_v24 = vpop.f32.mrf.mxu0 }
 0x1aa   :  { %1013 = vst.msk [vmem:[%s1878_s4 + $0x8] sm:$0xff] %vm1011_vm15, %v998_v5  ;;  %v993_v53 = vadd.f32 %v1054_v41, %v992_v24 }
 0x1ac   :  { %1012 = vst.msk [vmem:[%s1878_s4] sm:$0xff] %vm1011_vm15, %v993_v53 }
 0x1d3   :  { %v1076_v38 = vpop.f32.mrf.mxu1 }
 0x1d4   :  { %v1008_v43 = vadd.f32 %v1076_v38, %v1054_v41 }
 0x1d5   :  { %v1002_v29 = vpop.f32.mrf.mxu1 }
 0x1d6   :  { %1015 = vst.msk [vmem:[%s1878_s4 + $0x18] sm:$0xff] %vm1011_vm15, %v1008_v43  ;;  %v1003_v8 = vadd.f32 %v1054_v41, %v1002_v29 }
 0x1d8   :  { %1014 = vst.msk [vmem:[%s1878_s4 + $0x10] sm:$0xff] %vm1011_vm15, %v1003_v8 }
 0x1d9   :  { %1020 = vsyncpa [#allocation3], 1 }
 0x1da   :  { %1021 = vsyncpa [#allocation5], 1 }

</bundles_post_ra>
